<compile_context>
chip_gen: v5e
topology: v5e:2x2
jax: 0.10.0
libtpu: 0.0.40
codegen_flags: <defaults>
</compile_context>

<pallas_src>
import functools

import jax
import jax.numpy as jnp
from jax import lax
from jax.experimental import pallas as pl
from jax.experimental.pallas import tpu as pltpu


def gradient_loss_kernel(x_ref, t_ref, out_ref, xcol_ref, tcol_ref, *,
                         bc_total, d_total, d_tiled):
    # Blocks: x/t -> (tbc, td, H, W) native dtype; out -> (1, H, W) f32.
    # Scratch: xcol/tcol -> (tbc, td+1, H, 1) f32 (w==0 columns + D halo).
    tbc, td, h, w = x_ref.shape
    bc_step = pl.program_id(0)
    d_step = pl.program_id(1)

    # Border-validity mask over the two vreg axes; built once, shared by both
    # images (grad positions require h >= 1 and w >= 1).
    h_idx = lax.broadcasted_iota(jnp.int32, (h, w), 0)
    w_idx = lax.broadcasted_iota(jnp.int32, (h, w), 1)
    valid = (h_idx >= 1) & (w_idx >= 1)                        # (h, w)

    if d_tiled:
        # Global plane validity: grad lives on planes 1 .. d_total-1, and the
        # last D block may run past d_total (ragged tail reads garbage).
        p_idx = (jnp.arange(td, dtype=jnp.int32).reshape(td, 1, 1)
                 + d_step * td)
        valid = valid & (p_idx >= 1) & (p_idx < d_total)       # (td, h, w)

    if bc_total % tbc:
        # Ragged last (b, c) block: mask the tail volumes.
        v_idx = (jnp.arange(tbc, dtype=jnp.int32).reshape(tbc, 1, 1, 1)
                 + bc_step * tbc)
        valid = valid & (v_idx < bc_total)

    if d_tiled:
        def grad_field(v, col_ref):
            # col_ref slot 0 holds the w==0 column of the plane just before
            # this D block (the one-plane halo, carried across the D axis).
            col_ref[:, 1:] = v[..., 0:1]                       # this block's cols
            cols = col_ref[...]                                # (tbc, td+1, h, 1)
            dd = cols[:, 1:] - cols[:, :-1]                    # D-diff, all td planes
            col_ref[:, 0:1] = cols[:, td:td + 1]               # halo for next D step
            dh = v - pltpu.roll(v, 1, axis=2)                  # valid for h >= 1
            dw = v - pltpu.roll(v, 1, axis=3)                  # valid for w >= 1
            return dd * dd + dh * dh + dw * dw                 # (tbc, td, h, w)

        # Staggered f32 casts: input fully consumed before the target is cast.
        x = x_ref[...].astype(jnp.float32)
        gi = grad_field(x, xcol_ref)
        t = t_ref[...].astype(jnp.float32)
        gt = grad_field(t, tcol_ref)

        diff = jnp.where(valid, jnp.abs(gi - gt), 0.0)
        partial = jnp.sum(diff, axis=(0, 1))                   # (h, w)

        @pl.when(d_step == 0)
        def _():
            out_ref[...] = jnp.zeros_like(out_ref)
        out_ref[0] = out_ref[0] + partial                      # resident accumulator
    else:
        def grad_field(v):
            col0 = v[..., 0:1]                                 # w == 0 column
            dd0 = col0[:, 1:] - col0[:, :-1]                   # D-diff of that column
            v1 = v[:, 1:]                                      # slice D first: rolls,
            dh = v1 - pltpu.roll(v1, 1, axis=2)                # squares and temps only
            dw = v1 - pltpu.roll(v1, 1, axis=3)                # touch D-1 planes
            return dd0 * dd0 + dh * dh + dw * dw               # (tbc, D-1, h, w)

        x = x_ref[...].astype(jnp.float32)                     # cast-on-load
        gi = grad_field(x)                                     # x dead after this
        t = t_ref[...].astype(jnp.float32)
        gt = grad_field(t)

        diff = jnp.where(valid, jnp.abs(gi - gt), 0.0)
        out_ref[0] = jnp.sum(diff, axis=(0, 1))


def gradient_loss_image(input_img, target_img, *, block_budget_bytes=None):
    assert input_img.shape == target_img.shape and input_img.ndim == 5
    B, C, D, H, W = input_img.shape
    assert D >= 2 and H >= 2 and W >= 2, "GradientLossImage needs D, H, W >= 2"

    BC = B * C
    # Metadata-only reshape; inputs keep their native dtype (no extra HBM pass).
    xi = input_img.reshape(BC, D, H, W)
    xt = target_img.reshape(BC, D, H, W)

    # ---- per-generation VMEM sizing -----------------------------------------
    try:  # 128 MiB on v5e/v6e, 64 MiB on v7x
        vmem_cap = int(pltpu.get_tpu_info().vmem_capacity_bytes)
    except Exception:  # conservative (v7x-sized) fallback
        vmem_cap = 64 * 1024 * 1024
    vmem_limit = int(0.75 * vmem_cap)               # scoped limit w/ headroom
    budget = (int(block_budget_bytes) if block_budget_bytes is not None
              else int(0.75 * vmem_limit))          # live bytes per grid step

    itemsize = jnp.dtype(input_img.dtype).itemsize
    # Per (H, W) plane, per volume: 2 inputs x 2 pipeline buffers in the native
    # dtype + ~6 live f32 temporaries in the body (with staggered casts).
    plane_bytes = H * W * (4 * itemsize + 6 * 4)

    if D * plane_bytes <= budget:
        # Whole volumes fit: batch as many (b, c) volumes per step as possible,
        # but keep >= 2 bc-steps so v7x megacore uses both TensorCores.
        td = D
        steps_d = 1
        tbc = max(1, min(BC, budget // (D * plane_bytes)))
        if BC >= 2:
            tbc = min(tbc, pl.cdiv(BC, 2))
        steps_bc = pl.cdiv(BC, tbc)
        tbc = pl.cdiv(BC, steps_bc)                 # balance; ragged tail masked
        steps_bc = pl.cdiv(BC, tbc)
    else:
        # Volume too large for VMEM (v7x's 64 MiB hits this first): tile D with
        # a one-plane halo carried as a tiny w==0 column in VMEM scratch.
        tbc = 1
        steps_bc = BC
        td = max(2, min(D, budget // plane_bytes))
        steps_d = pl.cdiv(D, td)
        td = pl.cdiv(D, steps_d)                    # balance; ragged tail masked
        steps_d = pl.cdiv(D, td)
    d_tiled = steps_d > 1

    kernel = functools.partial(gradient_loss_kernel,
                               bc_total=BC, d_total=D, d_tiled=d_tiled)

    partials = pl.pallas_call(
        kernel,
        out_shape=jax.ShapeDtypeStruct((steps_bc, H, W), jnp.float32),
        grid_spec=pltpu.PrefetchScalarGridSpec(
            num_scalar_prefetch=0,
            grid=(steps_bc, steps_d),
            in_specs=[
                pl.BlockSpec((tbc, td, H, W), lambda i, d: (i, d, 0, 0)),
                pl.BlockSpec((tbc, td, H, W), lambda i, d: (i, d, 0, 0)),
            ],
            out_specs=pl.BlockSpec((1, H, W), lambda i, d: (i, 0, 0)),
            scratch_shapes=[
                pltpu.VMEM((tbc, td + 1, H, 1), jnp.float32),  # x cols + D halo
                pltpu.VMEM((tbc, td + 1, H, 1), jnp.float32),  # t cols + D halo
            ],
        ),
        compiler_params=pltpu.CompilerParams(
            # bc axis: independent per-step outputs -> megacore-shardable.
            # D axis: output accumulator + halo carry -> sequential.
            dimension_semantics=("parallel", "arbitrary"),
            vmem_limit_bytes=vmem_limit,
        ),
    )(xi, xt)

    # TODO(synk): for production shapes where W is not a multiple of 128 (or H
    # of the sublane tile), pad W/H at the wrapper/BlockSpec level and extend
    # the validity mask so stores stay lane-dense (unmasked vst).
    count = BC * (D - 1) * (H - 1) * (W - 1)
    # Final (tiny) cross-lane reduce + mean scaling outside the hot loop.
    return jnp.sum(partials) / count


def _reference_loss(a, b):
    # Plain-JAX reference mirroring the PyTorch code (f32 compute).
    a = a.astype(jnp.float32)
    b = b.astype(jnp.float32)

    def grad(img):
        dy = img[:, :, 1:, :, :] - img[:, :, :-1, :, :]
        dx = img[:, :, :, 1:, :] - img[:, :, :, :-1, :]
        dz = img[:, :, :, :, 1:] - img[:, :, :, :, :-1]
        return (dy[:, :, :, 1:, :1] ** 2
                + dx[:, :, 1:, :, 1:] ** 2
                + dz[:, :, 1:, 1:, :] ** 2)

    return jnp.mean(jnp.abs(grad(a) - grad(b)))


if __name__ == "__main__":
    key = jax.random.PRNGKey(0)
    k1, k2, k3, k4 = jax.random.split(key, 4)

    # (B, C, D, H, W): lane-friendly spatial extents (H multiple of 8,
    # W multiple of 128) so each (H, W) plane fills vregs.
    shape = (2, 3, 6, 8, 128)
    input_img = jax.random.normal(k1, shape, dtype=jnp.float32)
    target_img = jax.random.normal(k2, shape, dtype=jnp.float32)

    loss = jax.block_until_ready(gradient_loss_image(input_img, target_img))
    ref = jax.block_until_ready(_reference_loss(input_img, target_img))
    assert jnp.allclose(loss, ref, rtol=1e-5, atol=1e-5), (loss, ref)

    # Awkward B*C (ragged last bc block) and, with a forced small block budget,
    # the D-halo-tiled path (the large-volume / v7x-64-MiB fallback).
    shape2 = (1, 5, 7, 8, 128)
    inp2 = jax.random.normal(k3, shape2, dtype=jnp.float32)
    tgt2 = jax.random.normal(k4, shape2, dtype=jnp.float32)
    ref2 = jax.block_until_ready(_reference_loss(inp2, tgt2))

    loss2 = jax.block_until_ready(gradient_loss_image(inp2, tgt2))
    assert jnp.allclose(loss2, ref2, rtol=1e-5, atol=1e-5), (loss2, ref2)

    plane2 = 8 * 128 * (4 * 4 + 6 * 4)          # forces td=4 -> 2 ragged D steps
    loss2t = jax.block_until_ready(
        gradient_loss_image(inp2, tgt2, block_budget_bytes=4 * plane2))
    assert jnp.allclose(loss2t, ref2, rtol=1e-5, atol=1e-5), (loss2t, ref2)

    print("KERNEL_OK")
</pallas_src>

<mosaic_0001>
module attributes {stable_mosaic.version = 11 : i64} {
  func.func @gradient_loss_kernel(%arg0: i32, %arg1: i32, %arg2: memref<3x6x8x128xf32, #tpu.memory_space<vmem>>, %arg3: memref<3x6x8x128xf32, #tpu.memory_space<vmem>>, %arg4: memref<1x8x128xf32, #tpu.memory_space<vmem>>, %arg5: memref<3x7x8x1xf32, #tpu.memory_space<vmem>>, %arg6: memref<3x7x8x1xf32, #tpu.memory_space<vmem>>) attributes {dimension_semantics = [#tpu.dimension_semantics<parallel>, #tpu.dimension_semantics<arbitrary>], iteration_bounds = array<i64: 2, 1>, scalar_prefetch = 0 : i64, scratch_operands = 2 : i64, tpu.core_type = #tpu.core_type<tc>, window_params = [{transform_indices = @transform_0, window_bounds = array<i64: 3, 6, 8, 128>}, {transform_indices = @transform_1, window_bounds = array<i64: 3, 6, 8, 128>}, {transform_indices = @transform_2, window_bounds = array<i64: 1, 8, 128>}]} {
    %0 = tpu.iota {dimensions = array<i32: 0>} : vector<8x128xi32>
    %1 = tpu.iota {dimensions = array<i32: 1>} : vector<8x128xi32>
    %c1_i32 = arith.constant 1 : i32
    %2 = vector.broadcast %c1_i32 : i32 to vector<8x128xi32>
    %3 = arith.cmpi sge, %0, %2 : vector<8x128xi32>
    %c1_i32_0 = arith.constant 1 : i32
    %4 = vector.broadcast %c1_i32_0 : i32 to vector<8x128xi32>
    %5 = arith.cmpi sge, %1, %4 : vector<8x128xi32>
    %6 = arith.andi %3, %5 : vector<8x128xi1>
    %c0 = arith.constant 0 : index
    %c0_1 = arith.constant 0 : index
    %c0_2 = arith.constant 0 : index
    %c0_3 = arith.constant 0 : index
    %7 = vector.load %arg2[%c0, %c0_1, %c0_2, %c0_3] : memref<3x6x8x128xf32, #tpu.memory_space<vmem>>, vector<3x6x8x128xf32>
    %8 = vector.extract_strided_slice %7 {offsets = [0, 0, 0, 0], sizes = [3, 6, 8, 1], strides = [1, 1, 1, 1]} : vector<3x6x8x128xf32> to vector<3x6x8x1xf32>
    %9 = vector.extract_strided_slice %8 {offsets = [0, 1, 0, 0], sizes = [3, 5, 8, 1], strides = [1, 1, 1, 1]} : vector<3x6x8x1xf32> to vector<3x5x8x1xf32>
    %10 = vector.extract_strided_slice %8 {offsets = [0, 0, 0, 0], sizes = [3, 5, 8, 1], strides = [1, 1, 1, 1]} : vector<3x6x8x1xf32> to vector<3x5x8x1xf32>
    %11 = arith.subf %9, %10 : vector<3x5x8x1xf32>
    %12 = vector.extract_strided_slice %7 {offsets = [0, 1, 0, 0], sizes = [3, 5, 8, 128], strides = [1, 1, 1, 1]} : vector<3x6x8x128xf32> to vector<3x5x8x128xf32>
    %c1_i32_4 = arith.constant 1 : i32
    %13 = tpu.dynamic_rotate %12 by %c1_i32_4 dim 2 : vector<3x5x8x128xf32>, i32 -> vector<3x5x8x128xf32>
    %14 = arith.subf %12, %13 : vector<3x5x8x128xf32>
    %c1_i32_5 = arith.constant 1 : i32
    %15 = tpu.dynamic_rotate %12 by %c1_i32_5 dim 3 : vector<3x5x8x128xf32>, i32 -> vector<3x5x8x128xf32>
    %16 = arith.subf %12, %15 : vector<3x5x8x128xf32>
    %17 = arith.mulf %11, %11 : vector<3x5x8x1xf32>
    %18 = arith.mulf %14, %14 : vector<3x5x8x128xf32>
    %19 = vector.broadcast %17 : vector<3x5x8x1xf32> to vector<3x5x8x128xf32>
    %20 = arith.addf %19, %18 : vector<3x5x8x128xf32>
    %21 = arith.mulf %16, %16 : vector<3x5x8x128xf32>
    %22 = arith.addf %20, %21 : vector<3x5x8x128xf32>
    %c0_6 = arith.constant 0 : index
    %c0_7 = arith.constant 0 : index
    %c0_8 = arith.constant 0 : index
    %c0_9 = arith.constant 0 : index
    %23 = vector.load %arg3[%c0_6, %c0_7, %c0_8, %c0_9] : memref<3x6x8x128xf32, #tpu.memory_space<vmem>>, vector<3x6x8x128xf32>
    %24 = vector.extract_strided_slice %23 {offsets = [0, 0, 0, 0], sizes = [3, 6, 8, 1], strides = [1, 1, 1, 1]} : vector<3x6x8x128xf32> to vector<3x6x8x1xf32>
    %25 = vector.extract_strided_slice %24 {offsets = [0, 1, 0, 0], sizes = [3, 5, 8, 1], strides = [1, 1, 1, 1]} : vector<3x6x8x1xf32> to vector<3x5x8x1xf32>
    %26 = vector.extract_strided_slice %24 {offsets = [0, 0, 0, 0], sizes = [3, 5, 8, 1], strides = [1, 1, 1, 1]} : vector<3x6x8x1xf32> to vector<3x5x8x1xf32>
    %27 = arith.subf %25, %26 : vector<3x5x8x1xf32>
    %28 = vector.extract_strided_slice %23 {offsets = [0, 1, 0, 0], sizes = [3, 5, 8, 128], strides = [1, 1, 1, 1]} : vector<3x6x8x128xf32> to vector<3x5x8x128xf32>
    %c1_i32_10 = arith.constant 1 : i32
    %29 = tpu.dynamic_rotate %28 by %c1_i32_10 dim 2 : vector<3x5x8x128xf32>, i32 -> vector<3x5x8x128xf32>
    %30 = arith.subf %28, %29 : vector<3x5x8x128xf32>
    %c1_i32_11 = arith.constant 1 : i32
    %31 = tpu.dynamic_rotate %28 by %c1_i32_11 dim 3 : vector<3x5x8x128xf32>, i32 -> vector<3x5x8x128xf32>
    %32 = arith.subf %28, %31 : vector<3x5x8x128xf32>
    %33 = arith.mulf %27, %27 : vector<3x5x8x1xf32>
    %34 = arith.mulf %30, %30 : vector<3x5x8x128xf32>
    %35 = vector.broadcast %33 : vector<3x5x8x1xf32> to vector<3x5x8x128xf32>
    %36 = arith.addf %35, %34 : vector<3x5x8x128xf32>
    %37 = arith.mulf %32, %32 : vector<3x5x8x128xf32>
    %38 = arith.addf %36, %37 : vector<3x5x8x128xf32>
    %39 = arith.subf %22, %38 : vector<3x5x8x128xf32>
    %40 = math.absf %39 : vector<3x5x8x128xf32>
    %cst = arith.constant 0.000000e+00 : f32
    %41 = vector.shape_cast %6 : vector<8x128xi1> to vector<1x1x8x128xi1>
    %42 = vector.broadcast %41 : vector<1x1x8x128xi1> to vector<3x5x8x128xi1>
    %43 = vector.broadcast %cst : f32 to vector<3x5x8x128xf32>
    %44 = arith.select %42, %40, %43 : vector<3x5x8x128xi1>, vector<3x5x8x128xf32>
    %cst_12 = arith.constant dense<0.000000e+00> : vector<8x128xf32>
    %45 = vector.multi_reduction <add>, %44, %cst_12 [0, 1] : vector<3x5x8x128xf32> to vector<8x128xf32>
    %c0_13 = arith.constant 0 : index
    %c0_14 = arith.constant 0 : index
    %c0_15 = arith.constant 0 : index
    %46 = vector.load %arg4[%c0_13, %c0_14, %c0_15] : memref<1x8x128xf32, #tpu.memory_space<vmem>>, vector<1x8x128xf32>
    %47 = vector.shape_cast %46 : vector<1x8x128xf32> to vector<8x128xf32>
    %48 = vector.shape_cast %45 : vector<8x128xf32> to vector<1x8x128xf32>
    tpu.vector_store %arg4[%c0_13, %c0_14, %c0_15], %48 {strides = array<i32>} : memref<1x8x128xf32, #tpu.memory_space<vmem>>, vector<1x8x128xf32>,
    return
  }
  func.func @transform_0(%arg0: i32, %arg1: i32) -> (i32, i32, i32, i32) {
    %c0_i32 = arith.constant 0 : i32
    %c0_i32_0 = arith.constant 0 : i32
    %c0_i32_1 = arith.constant 0 : i32
    return %arg0, %arg1, %c0_i32, %c0_i32_0 : i32, i32, i32, i32
  }
  func.func @transform_1(%arg0: i32, %arg1: i32) -> (i32, i32, i32, i32) {
    %c0_i32 = arith.constant 0 : i32
    %c0_i32_0 = arith.constant 0 : i32
    %c0_i32_1 = arith.constant 0 : i32
    return %arg0, %arg1, %c0_i32, %c0_i32_0 : i32, i32, i32, i32
  }
  func.func @transform_2(%arg0: i32, %arg1: i32) -> (i32, i32, i32) {
    %c0_i32 = arith.constant 0 : i32
    %c0_i32_0 = arith.constant 0 : i32
    %c0_i32_1 = arith.constant 0 : i32
    return %arg0, %c0_i32, %c0_i32_0 : i32, i32, i32
  }
}

</mosaic_0001>

<bundles_post_ra>
// kernel: tpu_custom_call.1
= control target key start
LH: loop header
LB: loop body
LE: loop exit
PB: predicated region body
PF: predicated region fallthrough
CT: control target
= control target key end

     0   :  { %7 = vsyncpa [#allocation5], 0  ;;  %s1783_s0 = inlined_call_operand.hbm [shape: f32[6,6,8,128], index: 0, kind: input, shape index: {}]   ;;  %s1784_s1 = inlined_call_operand.hbm [shape: f32[6,6,8,128], index: 1, kind: input, shape index: {}]   ;;  %s1785_s2 = inlined_call_operand.hbm [shape: f32[2,8,128], index: 2, kind: output, shape index: {}]  }
   0x1   :  { %9 = vsyncpa [#allocation5 + $0x1], 0 }
   0x2   :  { %10 = vsyncpa [#allocation8], 0 }
   0x3   :  { %12 = vsyncpa [#allocation8 + $0x1], 0 }
   0x4   :  { %13 = vsyncpa [#allocation6], 0 }
   0x5   :  { %15 = vsyncpa [#allocation6 + $0x1], 0  ;;  %s1197_s9 = smov 0   ;;  %s1199_s10 = smov 0  }
   0x6   :  { %s1201_s11 = smov 0   ;;  %s1203_s12 = smov 0  }
   0x7   :  { %s1205_s13 = smov 0   ;;  %s1207_s14 = smov 0  }
   0x8 LB: > { %s937_s15 = sadd.s32 4294967295, %s1176_s14   ;;  %s938_s16 = sadd.s32 4294967294, %s1176_s14   ;;  %s1176_s14 = sphi %s1207_s14, %s21_s14   ;;  %s1172_s13 = sphi %s1205_s13, %s1799_s13   ;;  %s1168_s12 = sphi %s1203_s12, %s1798_s12   ;;  %s1164_s11 = sphi %s1201_s11, %s1797_s11   ;;  %s1160_s10 = sphi %s1199_s10, %s1796_s10   ;;  %s1156_s9 = sphi %s1197_s9, %s1795_s9  }
   0x9   : > { %s33_s17 = sadd.s32 1, %s1172_s13  ;;  %s42_s18 = sadd.s32 1, %s1164_s11 }
   0xa   : > { %p35_p0 = scmp.ge.s32.totalorder %s33_s17, 2  ;;  %p49_p1 = scmp.ne.s32.totalorder %s1164_s11, %s1160_s10 }
   0xb   : > { %p50_p2 = scmp.eq.s32.totalorder %s1176_s14, 0  ;;  %p55_p3 = scmp.ne.s32.totalorder %s1160_s10, %s1156_s9 }
   0xc   : > { %s1801_s17 = smov (%p35_p0, %s33_s17), 0  ;;  %p56_p5 = scmp.eq.s32.totalorder %s937_s15, 0 }
   0xd   : > { %p1238_p4 = por %p50_p2, %p49_p1  ;;  %s37_s20 = ssub.s32 %s1172_s13, %s1801_s17 }
   0xe   : > { %p107_p6 = scmp.eq.s32.totalorder %s937_s15, 1  ;;  %p40_p7 = scmp.eq.s32.totalorder %s37_s20, 0 }
   0xf   : > { %p1244_p8 = por %p56_p5, %p55_p3  ;;  %p113_p10 = scmp.eq.s32.totalorder %s938_s16, 1 }
  0x10   : > { %p1248_p9 = por %p107_p6, %p49_p1  ;;  %p940_p12 = scmp.ge.s32.totalorder %s1176_s14, 2 }
  0x11   : > { %s1253_s23 = scalar_select %p40_p7, %s1164_s11, %s42_s18  }
  0x12   : > { %p1255_p11 = por %p113_p10, %p55_p3  ;;  %p971_p13 = scmp.lt.s32.totalorder %s1176_s14, 2 }
  0x13   : > { %s1262_s25 = sand.u32 1, %s1164_s11   ;;  %s972_s28 = smul.u32 144, %s1172_s13 }
  0x14   : > { %s949_s26 = smul.u32 144, %s1262_s25  ;;  %p1267_p0 = pnand %p971_p13, %p1238_p4 }
  0x15   : > { %s145_s5 = scalar_lea.hbm %s1783_s0, %s972_s28  ;;  %s134_s7 = scalar_lea.sflag [#allocation5], %s1262_s25 }
  0x16   : > { %s137_s29 = scalar_lea.vmem [#allocation4], %s949_s26  ;;  %s146_s6 = sshll.u32 %s145_s5, 4  ;;  %s147_s6 = int_to_ptr.hbm [resolvable:$true] %s146_s6 }
  0x17   : > { %s148_s30 = sshll.u32 %s137_s29, 4  ;;  %s1178_s8 = smov 128   ;;  %s149_s30 = int_to_ptr.vmem [resolvable:$true] %s148_s30 }
  0x18   : > { %s1179_s15 = smov 8   ;;  %p943_p1 = scmp.ge.s32.totalorder %s1176_s14, 1 }
  0x19   : > { %963 = dma.hbm_to_vmem [thread:$0]  (!%p1267_p0), %s147_s6, 2304, %s149_s30, %s134_s7, %s1178_s8, %s1178_s8, %s1179_s15  }
  0x1a   : > { %p181_p2 = scmp.lt.s32.totalorder %s1176_s14, 3  ;;  %s170_s19 = scalar_lea.hbm %s1784_s1, %s972_s28 }
  0x1b   : > { %s171_s20 = sshll.u32 %s170_s19, 4  ;;  %s162_s29 = scalar_lea.vmem [#allocation7], %s949_s26  ;;  %s172_s20 = int_to_ptr.hbm [resolvable:$true] %s171_s20 }
  0x1c   : > { %p182_p3 = pnand %p943_p1, %p181_p2  ;;  %s173_s3 = sshll.u32 %s162_s29, 4  ;;  %s174_s3 = int_to_ptr.vmem [resolvable:$true] %s173_s3 }
  0x1d   : > { %s159_s4 = scalar_lea.sflag [#allocation8], %s1262_s25 }
  0x1e   : > { %966 = dma.hbm_to_vmem [thread:$0]  (!%p1267_p0), %s172_s20, 2304, %s174_s3, %s159_s4, %s1178_s8, %s1178_s8, %s1179_s15  }
  0x1f   : > { %185 = sbr.rel (%p182_p3) target bundleno = 329 (0x149), region = 28 }
  0x24   : > { %s1287_s5 = sand.u32 1, %s1160_s10  }
  0x25   : > { %s953_s30 = smul.u32 144, %s1287_s5  ;;  %s188_s6 = scalar_lea.sflag [#allocation5], %s1287_s5 }
  0x27   : > { %s1291_s7 = scalar_lea.vmem [#allocation4], %s953_s30 }
  0x28   : > { %1143 = dma.done.wait (%p1244_p8), %s188_s6, 2304  }
  0x29   : > { %1145 = vsyncadd (%p1244_p8), %s188_s6, 4294964992  ;;  %s198_s25 = scalar_lea.sflag [#allocation8], %s1287_s5  ;;  %s1298_s26 = scalar_lea.vmem [#allocation7], %s953_s30 }
  0x2a   : > { %1147 = dma.done.wait (%p1244_p8), %s198_s25, 2304  }
  0x2b   : > { %1149 = vsyncadd (%p1244_p8), %s198_s25, 4294964992  ;;  %v1305_v0 = vld [vmem:[%s1291_s7 + $0x28] sm:$0xff]  ;;  %v1308_v1 = vld [vmem:[%s1291_s7 + $0x18] sm:$0xff]  ;;  %s1180_s27 = smov 1   ;;  %v1181_v3 = vmov 0   ;;  %s944_s21 = sshll.u32 %s1287_s5, 3 }
  0x2c   : > { %v1311_v2 = vld [vmem:[%s1291_s7 + $0x8] sm:$0xff]  ;;  %310 = vrot.lane.b32.xlu2 %v1305_v0, %s1180_s27  ;;  %306 = vrot.lane.b32.xlu1 %v1308_v1, %s1180_s27  ;;  %v1320_v4 = vld [vmem:[%s1291_s7 + $0x38] sm:$0xff]  ;;  %s946_s28 = sshll.u32 %s1168_s12, 3  ;;  %s227_s12 = scalar_lea.vmem [#allocation9], %s944_s21 }
  0x2d   : > { %302 = vrot.lane.b32.xlu0 %v1311_v2, %s1180_s27  ;;  %1029 = vset.pattern.permute.xlu2 %v1181_v3  ;;  %v1323_v5 = vld [vmem:[%s1291_s7 + $0x20] sm:$0xff]  ;;  %v1326_v6 = vld [vmem:[%s1291_s7 + $0x10] sm:$0xff]  ;;  %v1338_v8 = vld [vmem:[%s1291_s7 + $0x48] sm:$0xff]  ;;  %s828_s16 = scalar_lea.hbm %s1785_s2, %s946_s28  ;;  %s830_s18 = sshll.u32 %s227_s12, 4  ;;  %s831_s18 = int_to_ptr.vmem [resolvable:$true] %s830_s18 }
  0x2e   : > { %1028 = vset.pattern.permute.xlu1 %v1181_v3  ;;  %1027 = vset.pattern.permute.xlu0 %v1181_v3  ;;  %v1335_v7 = vld [vmem:[%s1291_s7 + $0x50] sm:$0xff]  ;;  %v1341_v9 = vld [vmem:[%s1291_s7 + $0x40] sm:$0xff]  ;;  %v1353_v11 = vld [vmem:[%s1291_s7 + $0x68] sm:$0xff]  ;;  %v259_v17 = vsub.f32 %v1308_v1, %v1326_v6  ;;  %v258_v18 = vsub.f32 %v1326_v6, %v1311_v2  ;;  %v261_v24 = vsub.f32 %v1305_v0, %v1323_v5  ;;  %s832_s19 = sshll.u32 %s828_s16, 4  ;;  %s818_s20 = scalar_lea.sflag [#allocation6], %s1287_s5  ;;  %s833_s19 = int_to_ptr.hbm [resolvable:$true] %s832_s19 }
  0x2f   : > { %v1350_v10 = vld [vmem:[%s1291_s7 + $0x70] sm:$0xff]  ;;  %v1356_v12 = vld [vmem:[%s1291_s7 + $0x58] sm:$0xff]  ;;  %v1365_v13 = vld [vmem:[%s1291_s7 + $0x88] sm:$0xff]  ;;  %v260_v25 = vsub.f32 %v1323_v5, %v1308_v1  ;;  %v264_v30 = vsub.f32 %v1338_v8, %v1341_v9  ;;  %v263_v31 = vsub.f32 %v1341_v9, %v1320_v4  ;;  %v265_v32 = vsub.f32 %v1335_v7, %v1338_v8  ;;  %s1104_s29 = sshra.s32 %s833_s19, 4  ;;  %s1110_s6 = scalar_lea.hbm %s1785_s2, 16  ;;  %s1105_s29 = int_to_ptr.hbm [resolvable:$true] %s1104_s29 }
  0x30   : > { %v1368_v14 = vld [vmem:[%s1291_s7 + $0x80] sm:$0xff]  ;;  %v1371_v15 = vld [vmem:[%s1291_s7 + $0x78] sm:$0xff]  ;;  %v349_v20 = vmul.f32 %v259_v17, %v259_v17  ;;  %v348_v21 = vmul.f32 %v258_v18, %v258_v18  ;;  %v245_v23 = vld [vmem:[%s1291_s7 + $0x30] sm:$0xff]  ;;  %v351_v27 = vmul.f32 %v261_v24, %v261_v24  ;;  %v266_v38 = vsub.f32 %v1356_v12, %v1335_v7  ;;  %s1106_s3 = scalar_lea.hbm %s1105_s29, 8  ;;  %p1111_p7 = scmp.lt.s32.totalorder %s1105_s29, %s1785_s2 }
  0x31   : > { %v239_v16 = vld [vmem:[%s1291_s7] sm:$0xff]  ;;  %v262_v26 = vsub.f32 %v1320_v4, %v245_v23  ;;  %v350_v28 = vmul.f32 %v260_v25, %v260_v25  ;;  %v354_v33 = vmul.f32 %v264_v30, %v264_v30  ;;  %v353_v34 = vmul.f32 %v263_v31, %v263_v31  ;;  %v1410_v49 = vld [vmem:[%s1298_s26 + $0x10] sm:$0xff]  ;;  %v1413_v50 = vld [vmem:[%s1298_s26 + $0x8] sm:$0xff]  ;;  %p1107_p4 = scmp.ne.s32.totalorder %s1105_s29, %s1106_s3  ;;  %p1112_p8 = scmp.lt.s32.totalorder %s1110_s6, %s1106_s3 }
  0x32   : > { %v257_v19 = vsub.f32 %v1311_v2, %v239_v16  ;;  %v355_v35 = vmul.f32 %v265_v32, %v265_v32  ;;  %v251_v36 = vld [vmem:[%s1291_s7 + $0x60] sm:$0xff]  ;;  %v268_v39 = vsub.f32 %v1350_v10, %v1353_v11  ;;  %v356_v41 = vmul.f32 %v266_v38, %v266_v38  ;;  %v1416_v51 = vld [vmem:[%s1298_s26 + $0x18] sm:$0xff]  ;;  %v1425_v52 = vld [vmem:[%s1298_s26 + $0x28] sm:$0xff] }
  0x33   : > { %v352_v29 = vmul.f32 %v262_v26, %v262_v26  ;;  %v267_v37 = vsub.f32 %v1353_v11, %v251_v36  ;;  %v270_v43 = vsub.f32 %v1368_v14, %v1371_v15  ;;  %v269_v44 = vsub.f32 %v1371_v15, %v1350_v10  ;;  %v1428_v53 = vld [vmem:[%s1298_s26 + $0x20] sm:$0xff]  ;;  %v1431_v54 = vld [vmem:[%s1298_s26 + $0x38] sm:$0xff]  ;;  %v1442_v56 = vld [vmem:[%s1298_s26 + $0x48] sm:$0xff]  ;;  %p1108_p5 = pnand %p1107_p4, %p1248_p9  ;;  %p1113_p10 = por %p1112_p8, %p1111_p7 }
  0x34   : > { %312 = vrot.lane.b32.xlu2 %v1320_v4, %s1180_s27  ;;  %308 = vrot.lane.b32.xlu1 %v1323_v5, %s1180_s27  ;;  %v347_v22 = vmul.f32 %v257_v19, %v257_v19  ;;  %v358_v42 = vmul.f32 %v268_v39, %v268_v39  ;;  %v271_v45 = vsub.f32 %v1365_v13, %v1368_v14  ;;  %v1445_v57 = vld [vmem:[%s1298_s26 + $0x40] sm:$0xff]  ;;  %v1448_v58 = vld [vmem:[%s1298_s26 + $0x50] sm:$0xff] }
  0x35   : > { %304 = vrot.lane.b32.xlu0 %v1326_v6, %s1180_s27  ;;  %v357_v40 = vmul.f32 %v267_v37, %v267_v37  ;;  %v360_v46 = vmul.f32 %v270_v43, %v270_v43  ;;  %v359_v47 = vmul.f32 %v269_v44, %v269_v44  ;;  %v1459_v60 = vld [vmem:[%s1298_s26 + $0x68] sm:$0xff]  ;;  %v1462_v61 = vld [vmem:[%s1298_s26 + $0x58] sm:$0xff]  ;;  %v1465_v62 = vld [vmem:[%s1298_s26 + $0x70] sm:$0xff]  ;;  %v516_v19 = vsub.f32 %v1410_v49, %v1413_v50  ;;  %p1109_p6 = pneg %p1108_p5 }
  0x36   : > { %v361_v48 = vmul.f32 %v271_v45, %v271_v45  ;;  %v1476_v3 = vld [vmem:[%s1298_s26 + $0x80] sm:$0xff]  ;;  %v1479_v16 = vld [vmem:[%s1298_s26 + $0x78] sm:$0xff]  ;;  %v1483_v18 = vld [vmem:[%s1298_s26 + $0x88] sm:$0xff]  ;;  %v519_v30 = vsub.f32 %v1425_v52, %v1428_v53  ;;  %v518_v31 = vsub.f32 %v1428_v53, %v1416_v51  ;;  %v522_v43 = vsub.f32 %v1442_v56, %v1445_v57 }
  0x37   : > { %v497_v17 = vld [vmem:[%s1298_s26] sm:$0xff]  ;;  %v606_v25 = vmul.f32 %v516_v19, %v516_v19  ;;  %v521_v44 = vsub.f32 %v1445_v57, %v1431_v54  ;;  %v523_v45 = vsub.f32 %v1448_v58, %v1442_v56  ;;  %p1114_p13 = pnand %p1113_p10, %p1109_p6 }
  0x38   : > { %v609_v37 = vmul.f32 %v519_v30, %v519_v30  ;;  %v608_v38 = vmul.f32 %v518_v31, %v518_v31  ;;  %v524_v31 = vsub.f32 %v1462_v61, %v1448_v58 }
  0x3c   : > { %318 = vrot.lane.b32.xlu2 %v1335_v7, %s1180_s27  ;;  %316 = vrot.lane.b32.xlu1 %v1338_v8, %s1180_s27 }
  0x3d   : > { %314 = vrot.lane.b32.xlu0 %v1341_v9, %s1180_s27 }
  0x44   : > { %324 = vrot.lane.b32.xlu2 %v1350_v10, %s1180_s27  ;;  %322 = vrot.lane.b32.xlu1 %v1353_v11, %s1180_s27 }
  0x45   : > { %320 = vrot.lane.b32.xlu0 %v1356_v12, %s1180_s27 }
  0x4c   : > { %330 = vrot.lane.b32.xlu2 %v1365_v13, %s1180_s27  ;;  %328 = vrot.lane.b32.xlu1 %v1368_v14, %s1180_s27 }
  0x4d   : > { %326 = vrot.lane.b32.xlu0 %v1371_v15, %s1180_s27 }
  0x54   : > { %389 = vperm.xlu2 %1029, %v349_v20   ;;  %384 = vperm.xlu1 %1028, %v348_v21   ;;  %v515_v20 = vsub.f32 %v1413_v50, %v497_v17  ;;  %v517_v21 = vsub.f32 %v1416_v51, %v1410_v49 }
  0x55   : > { %379 = vperm.xlu0 %1027, %v347_v22  }
  0x56   : > { %v605_v26 = vmul.f32 %v515_v20, %v515_v20  ;;  %v612_v20 = vmul.f32 %v522_v43, %v522_v43 }
  0x5c   : > { %399 = vperm.xlu2 %1029, %v351_v27   ;;  %394 = vperm.xlu1 %1028, %v350_v28   ;;  %v607_v27 = vmul.f32 %v517_v21, %v517_v21  ;;  %v503_v28 = vld [vmem:[%s1298_s26 + $0x30] sm:$0xff]  ;;  %v611_v21 = vmul.f32 %v521_v44, %v521_v44 }
  0x5d   : > { %404 = vperm.xlu0 %1027, %v352_v29   ;;  %v274_v29 = vrot.slane %v1308_v1, 7  ;;  %v520_v32 = vsub.f32 %v1431_v54, %v503_v28 }
  0x5f   : > { %v289_v36 = vsub.f32 %v1308_v1, %v274_v29  ;;  %v610_v39 = vmul.f32 %v520_v32, %v520_v32  ;;  %v279_v29 = vrot.slane %v1338_v8, 7  ;;  %v526_v32 = vsub.f32 %v1465_v62, %v1459_v60 }
  0x61   : > { %v616_v43 = vmul.f32 %v526_v32, %v526_v32 }
  0x64   : > { %414 = vperm.xlu2 %1029, %v354_v33   ;;  %409 = vperm.xlu1 %1028, %v353_v34  }
  0x65   : > { %419 = vperm.xlu0 %1027, %v355_v35  }
  0x6c   : > { %429 = vperm.xlu2 %1029, %v357_v40   ;;  %424 = vperm.xlu1 %1028, %v356_v41   ;;  %v364_v41 = vmul.f32 %v289_v36, %v289_v36 }
  0x6d   : > { %434 = vperm.xlu0 %1027, %v358_v42   ;;  %v276_v42 = vrot.slane %v1305_v0, 7 }
  0x6f   : > { %v291_v19 = vsub.f32 %v1305_v0, %v276_v42 }
  0x71   : > { %v366_v28 = vmul.f32 %v291_v19, %v291_v19  ;;  %v527_v19 = vsub.f32 %v1479_v16, %v1465_v62 }
  0x74   : > { %444 = vperm.xlu2 %1029, %v360_v46   ;;  %439 = vperm.xlu1 %1028, %v359_v47  }
  0x75   : > { %449 = vperm.xlu0 %1027, %v361_v48  }
  0x7c   : > { %562 = vrot.lane.b32.xlu2 %v1410_v49, %s1180_s27  ;;  %560 = vrot.lane.b32.xlu1 %v1413_v50, %s1180_s27 }
  0x7d   : > { %564 = vrot.lane.b32.xlu0 %v1416_v51, %s1180_s27 }
  0x84   : > { %568 = vrot.lane.b32.xlu2 %v1425_v52, %s1180_s27  ;;  %566 = vrot.lane.b32.xlu1 %v1428_v53, %s1180_s27 }
  0x85   : > { %570 = vrot.lane.b32.xlu0 %v1431_v54, %s1180_s27 }
  0x86   : > { %v1439_v55 = vpop.permute.xlu2 %310 }
  0x8c   : > { %574 = vrot.lane.b32.xlu2 %v1442_v56, %s1180_s27  ;;  %572 = vrot.lane.b32.xlu1 %v1445_v57, %s1180_s27 }
  0x8d   : > { %576 = vrot.lane.b32.xlu0 %v1448_v58, %s1180_s27 }
  0x8e   : > { %v1456_v59 = vpop.permute.xlu2 %312 }
  0x94   : > { %580 = vrot.lane.b32.xlu2 %v1459_v60, %s1180_s27  ;;  %578 = vrot.lane.b32.xlu1 %v1462_v61, %s1180_s27 }
  0x95   : > { %582 = vrot.lane.b32.xlu0 %v1465_v62, %s1180_s27 }
  0x96   : > { %v1473_v63 = vpop.permute.xlu2 %318 }
  0x9c   : > { %586 = vrot.lane.b32.xlu2 %v1476_v3, %s1180_s27  ;;  %584 = vrot.lane.b32.xlu1 %v1479_v16, %s1180_s27 }
  0x9d   : > { %588 = vrot.lane.b32.xlu0 %v1483_v18, %s1180_s27 }
  0x9e   : > { %v1496_v22 = vpop.permute.xlu2 %324  ;;  %v307_v23 = vpop.permute.xlu1 %306 }
  0x9f   : > { %v1498_v24 = vpop.permute.xlu0 %302  ;;  %v334_v40 = vsub.f32 %v1308_v1, %v307_v23 }
  0xa1   : > { %v469_v48 = vmul.f32 %v334_v40, %v334_v40 }
  0xa4   : > { %642 = vperm.xlu2 %1029, %v606_v25   ;;  %637 = vperm.xlu1 %1028, %v605_v26   ;;  %v613_v25 = vmul.f32 %v523_v45, %v523_v45  ;;  %v509_v26 = vld [vmem:[%s1298_s26 + $0x60] sm:$0xff] }
  0xa5   : > { %647 = vperm.xlu0 %1027, %v607_v27   ;;  %v336_v27 = vsub.f32 %v1305_v0, %v1439_v55  ;;  %v525_v30 = vsub.f32 %v1459_v60, %v509_v26  ;;  %v294_v0 = vsub.f32 %v1338_v8, %v279_v29 }
  0xa6   : > { %v1507_v33 = vpop.permute.xlu2 %330  ;;  %v1509_v34 = vpop.permute.xlu1 %308 }
  0xa7   : > { %v1511_v35 = vpop.permute.xlu0 %304  ;;  %v615_v55 = vmul.f32 %v525_v30, %v525_v30  ;;  %v369_v45 = vmul.f32 %v294_v0, %v294_v0  ;;  %v285_v0 = vrot.slane %v1368_v14, 7 }
  0xac   : > { %657 = vperm.xlu2 %1029, %v609_v37   ;;  %652 = vperm.xlu1 %1028, %v608_v38   ;;  %v471_v38 = vmul.f32 %v336_v27, %v336_v27 }
  0xad   : > { %662 = vperm.xlu0 %1027, %v610_v39  }
  0xae   : > { %v317_v46 = vpop.permute.xlu1 %316  ;;  %v390_v47 = vpop.permute.xlu2 %389 }
  0xaf   : > { %v454_v1 = vadd.f32 %v390_v47, %v364_v41  ;;  %v1522_v17 = vpop.permute.xlu0 %314  ;;  %v614_v41 = vmul.f32 %v524_v31, %v524_v31  ;;  %v339_v44 = vsub.f32 %v1338_v8, %v317_v46  ;;  %v282_v47 = vrot.slane %v1353_v11, 7 }
  0xb0   : > { %v617_v31 = vmul.f32 %v527_v19, %v527_v19 }
  0xb1   : > { %v1525_v23 = vadd.f32 %v469_v48, %v454_v1  ;;  %v273_v48 = vrot.slane %v1326_v6, 7  ;;  %v528_v1 = vsub.f32 %v1476_v3, %v1479_v16 }
  0xb3   : > { %v288_v29 = vsub.f32 %v1326_v6, %v273_v48  ;;  %v618_v30 = vmul.f32 %v528_v1, %v528_v1  ;;  %v277_v48 = vrot.slane %v1320_v4, 7 }
  0xb4   : > { %672 = vperm.xlu2 %1029, %v612_v20   ;;  %667 = vperm.xlu1 %1028, %v611_v21   ;;  %v272_v20 = vrot.slane %v1311_v2, 7  ;;  %v529_v21 = vsub.f32 %v1483_v18, %v1476_v3 }
  0xb5   : > { %677 = vperm.xlu0 %1027, %v613_v25   ;;  %v474_v25 = vmul.f32 %v339_v44, %v339_v44  ;;  %v275_v44 = vrot.slane %v1323_v5, 7 }
  0xb6   : > { %v323_v36 = vpop.permute.xlu1 %322  ;;  %v400_v37 = vpop.permute.xlu2 %399  ;;  %v287_v32 = vsub.f32 %v1311_v2, %v272_v20 }
  0xb7   : > { %v456_v39 = vadd.f32 %v400_v37, %v366_v28  ;;  %v1536_v40 = vpop.permute.xlu0 %320  ;;  %v297_v28 = vsub.f32 %v1353_v11, %v282_v47 }
  0xb8   : > { %v362_v47 = vmul.f32 %v287_v32, %v287_v32 }
  0xb9   : > { %v1539_v42 = vadd.f32 %v471_v38, %v456_v39  ;;  %v619_v38 = vmul.f32 %v529_v21, %v529_v21  ;;  %v333_v39 = vsub.f32 %v1326_v6, %v1511_v35  ;;  %v300_v35 = vsub.f32 %v1368_v14, %v285_v0 }
  0xba   : > { %v337_v0 = vsub.f32 %v1320_v4, %v1456_v59  ;;  %v338_v59 = vsub.f32 %v1341_v9, %v1522_v17 }
  0xbb   : > { %v468_v1 = vmul.f32 %v333_v39, %v333_v39  ;;  %v375_v32 = vmul.f32 %v300_v35, %v300_v35  ;;  %v278_v39 = vrot.slane %v1341_v9, 7 }
  0xbc   : > { %687 = vperm.xlu2 %1029, %v615_v55   ;;  %682 = vperm.xlu1 %1028, %v614_v41   ;;  %v342_v55 = vsub.f32 %v1353_v11, %v323_v36  ;;  %v372_v41 = vmul.f32 %v297_v28, %v297_v28 }
  0xbd   : > { %692 = vperm.xlu0 %1027, %v616_v43   ;;  %v363_v43 = vmul.f32 %v288_v29, %v288_v29  ;;  %v335_v29 = vsub.f32 %v1323_v5, %v1509_v34 }
  0xbe   : > { %v329_v8 = vpop.permute.xlu1 %328  ;;  %v415_v46 = vpop.permute.xlu2 %414  ;;  %v477_v20 = vmul.f32 %v342_v55, %v342_v55 }
  0xbf   : > { %v459_v26 = vadd.f32 %v415_v46, %v369_v45  ;;  %v1551_v27 = vpop.permute.xlu0 %326  ;;  %v332_v45 = vsub.f32 %v1311_v2, %v1498_v24  ;;  %v290_v46 = vsub.f32 %v1323_v5, %v275_v44  ;;  %v292_v2 = vsub.f32 %v1320_v4, %v277_v48 }
  0xc1   : > { %v1556_v37 = vadd.f32 %v474_v25, %v459_v26  ;;  %v467_v25 = vmul.f32 %v332_v45, %v332_v45  ;;  %v367_v55 = vmul.f32 %v292_v2, %v292_v2  ;;  %v473_v2 = vmul.f32 %v338_v59, %v338_v59 }
  0xc2   : > { %v346_v59 = vsub.f32 %v1365_v13, %v1507_v33 }
  0xc4   : > { %702 = vperm.xlu2 %1029, %v618_v30   ;;  %697 = vperm.xlu1 %1028, %v617_v31   ;;  %v345_v31 = vsub.f32 %v1368_v14, %v329_v8  ;;  %v472_v14 = vmul.f32 %v337_v0, %v337_v0 }
  0xc5   : > { %707 = vperm.xlu0 %1027, %v619_v38   ;;  %v365_v38 = vmul.f32 %v290_v46, %v290_v46  ;;  %v283_v46 = vrot.slane %v1350_v10, 7 }
  0xc6   : > { %v430_v19 = vpop.permute.xlu2 %429  ;;  %v385_v6 = vpop.permute.xlu1 %384 }
  0xc7   : > { %v462_v11 = vadd.f32 %v430_v19, %v372_v41  ;;  %v453_v36 = vadd.f32 %v385_v6, %v363_v43  ;;  %v380_v21 = vpop.permute.xlu0 %379  ;;  %v280_v41 = vrot.slane %v1335_v7, 7  ;;  %v470_v43 = vmul.f32 %v335_v29, %v335_v29 }
  0xc8   : > { %v452_v26 = vadd.f32 %v380_v21, %v362_v47  ;;  %v480_v47 = vmul.f32 %v345_v31, %v345_v31 }
  0xc9   : > { %v1569_v24 = vadd.f32 %v477_v20, %v462_v11  ;;  %v1571_v28 = vadd.f32 %v468_v1, %v453_v36  ;;  %v293_v1 = vsub.f32 %v1341_v9, %v278_v39  ;;  %v295_v19 = vsub.f32 %v1335_v7, %v280_v41 }
  0xca   : > { %v1575_v30 = vadd.f32 %v467_v25, %v452_v26  ;;  %v281_v11 = vrot.slane %v1356_v12, 7  ;;  %v340_v36 = vsub.f32 %v1335_v7, %v1473_v63  ;;  %v298_v9 = vsub.f32 %v1350_v10, %v283_v46 }
  0xcb   : > { %v368_v20 = vmul.f32 %v293_v1, %v293_v1  ;;  %v370_v21 = vmul.f32 %v295_v19, %v295_v19  ;;  %v341_v7 = vsub.f32 %v1356_v12, %v1536_v40  ;;  %v343_v41 = vsub.f32 %v1350_v10, %v1496_v22 }
  0xcc   : > { %v344_v10 = vsub.f32 %v1371_v15, %v1551_v27 }
  0xce   : > { %v445_v44 = vpop.permute.xlu2 %444  ;;  %v395_v45 = vpop.permute.xlu1 %394 }
  0xcf   : > { %v465_v48 = vadd.f32 %v445_v44, %v375_v32  ;;  %v455_v5 = vadd.f32 %v395_v45, %v365_v38  ;;  %v405_v34 = vpop.permute.xlu0 %404  ;;  %v296_v32 = vsub.f32 %v1356_v12, %v281_v11  ;;  %v475_v38 = vmul.f32 %v340_v36, %v340_v36 }
  0xd0   : > { %v457_v8 = vadd.f32 %v405_v34, %v367_v55  ;;  %v284_v55 = vrot.slane %v1371_v15, 7  ;;  %v286_v44 = vrot.slane %v1365_v13, 7  ;;  %v479_v36 = vmul.f32 %v344_v10, %v344_v10 }
  0xd1   : > { %v1584_v6 = vadd.f32 %v480_v47, %v465_v48  ;;  %v1586_v35 = vadd.f32 %v470_v43, %v455_v5  ;;  %v371_v63 = vmul.f32 %v296_v32, %v296_v32  ;;  %v373_v43 = vmul.f32 %v298_v9, %v298_v9 }
  0xd2   : > { %v1588_v4 = vadd.f32 %v472_v14, %v457_v8  ;;  %v476_v48 = vmul.f32 %v341_v7, %v341_v7  ;;  %v299_v1 = vsub.f32 %v1371_v15, %v284_v55  ;;  %v478_v14 = vmul.f32 %v343_v41, %v343_v41 }
  0xd3   : > { %v301_v12 = vsub.f32 %v1365_v13, %v286_v44 }
  0xd4   : > { %v374_v22 = vmul.f32 %v299_v1, %v299_v1  ;;  %v534_v1 = vrot.slane %v1425_v52, 7 }
  0xd6   : > { %v563_v25 = vpop.permute.xlu2 %562  ;;  %v410_v26 = vpop.permute.xlu1 %409 }
  0xd7   : > { %v458_v29 = vadd.f32 %v410_v26, %v368_v20  ;;  %v420_v31 = vpop.permute.xlu0 %419  ;;  %v376_v20 = vmul.f32 %v301_v12, %v301_v12  ;;  %v481_v26 = vmul.f32 %v346_v59, %v346_v59 }
  0xd8   : > { %v460_v39 = vadd.f32 %v420_v31, %v370_v21 }
  0xd9   : > { %v1598_v17 = vadd.f32 %v473_v2, %v458_v29 }
  0xda   : > { %v1600_v0 = vadd.f32 %v475_v38, %v460_v39 }
  0xde   : > { %v569_v45 = vpop.permute.xlu2 %568  ;;  %v425_v47 = vpop.permute.xlu1 %424 }
  0xdf   : > { %v461_v5 = vadd.f32 %v425_v47, %v371_v63  ;;  %v435_v34 = vpop.permute.xlu0 %434  ;;  %v531_v63 = vrot.slane %v1410_v49, 7 }
  0xe0   : > { %v463_v8 = vadd.f32 %v435_v34, %v373_v43  ;;  %v591_v34 = vsub.f32 %v1410_v49, %v563_v25  ;;  %v533_v25 = vrot.slane %v1428_v53, 7 }
  0xe1   : > { %v1610_v40 = vadd.f32 %v476_v48, %v461_v5  ;;  %v546_v43 = vsub.f32 %v1410_v49, %v531_v63  ;;  %v530_v48 = vrot.slane %v1413_v50, 7  ;;  %v532_v5 = vrot.slane %v1416_v51, 7 }
  0xe2   : > { %v1612_v19 = vadd.f32 %v478_v14, %v463_v8 }
  0xe3   : > { %v621_v47 = vmul.f32 %v546_v43, %v546_v43  ;;  %v545_v10 = vsub.f32 %v1413_v50, %v530_v48  ;;  %v537_v48 = vrot.slane %v1442_v56, 7 }
  0xe5   : > { %v620_v49 = vmul.f32 %v545_v10, %v545_v10  ;;  %v548_v10 = vsub.f32 %v1428_v53, %v533_v25 }
  0xe6   : > { %v440_v11 = vpop.permute.xlu1 %439  ;;  %v1618_v2 = vpop.permute.xlu2 %574 }
  0xe7   : > { %v464_v21 = vadd.f32 %v440_v11, %v374_v22  ;;  %v450_v46 = vpop.permute.xlu0 %449  ;;  %v232_v22 = vlaneseq  ;;  %v726_v11 = vmul.f32 %v591_v34, %v591_v34  ;;  %v623_v25 = vmul.f32 %v548_v10, %v548_v10 }
  0xe8   : > { %v466_v29 = vadd.f32 %v450_v46, %v376_v20  ;;  %v547_v20 = vsub.f32 %v1416_v51, %v532_v5  ;;  %v594_v5 = vsub.f32 %v1425_v52, %v569_v45 }
  0xe9   : > { %v1620_v31 = vadd.f32 %v479_v36, %v464_v21  ;;  %v549_v36 = vsub.f32 %v1425_v52, %v534_v1  ;;  %v235_v43 = vand.u32 127, %v232_v22 }
  0xea   : > { %v1622_v32 = vadd.f32 %v481_v26, %v466_v29  ;;  %v233_v29 = vshrl.u32 %v232_v22, 7  ;;  %v622_v63 = vmul.f32 %v547_v20, %v547_v20  ;;  %v552_v20 = vsub.f32 %v1442_v56, %v537_v48 }
  0xeb   : > { %vm237_vm1 = vcmp.ge.s32.totalorder %v235_v43, 1  ;;  %v597_v43 = vsub.f32 %v1442_v56, %v1618_v2 }
  0xec   : > { %1791 = vst [vmem:[#allocation13_spill] sm:$0xff] %v1622_v32  ;;  %vm236_vm0 = vcmp.ge.s32.totalorder %v233_v29, 1  ;;  %v729_v32 = vmul.f32 %v594_v5, %v594_v5 }
  0xed   : > { %vm1665_vm2 = vmand %vm236_vm0, %vm237_vm1 }
  0xee   : > { %v561_v38 = vpop.permute.xlu1 %560  ;;  %v1624_v15 = vpop.permute.xlu2 %580 }
  0xef   : > { %v565_v39 = vpop.permute.xlu0 %564  ;;  %v590_v21 = vsub.f32 %v1413_v50, %v561_v38  ;;  %v600_v5 = vsub.f32 %v1459_v60, %v1624_v15 }
  0xf0   : > { %v592_v26 = vsub.f32 %v1416_v51, %v565_v39 }
  0xf1   : > { %v725_v1 = vmul.f32 %v590_v21, %v590_v21 }
  0xf6   : > { %v567_v27 = vpop.permute.xlu1 %566  ;;  %v1626_v13 = vpop.permute.xlu2 %586 }
  0xf7   : > { %v571_v9 = vpop.permute.xlu0 %570  ;;  %v593_v52 = vsub.f32 %v1428_v53, %v567_v27  ;;  %v538_v27 = vrot.slane %v1448_v58, 7 }
  0xf9   : > { %v553_v15 = vsub.f32 %v1448_v58, %v538_v27 }
  0xfe   : > { %v1628_v33 = vpop.permute.xlu1 %572  ;;  %v643_v55 = vpop.permute.xlu2 %642 }
  0xff   : > { %v1630_v7 = vpop.permute.xlu0 %576  ;;  %v711_v8 = vadd.f32 %v643_v55, %v621_v47  ;;  %v535_v55 = vrot.slane %v1431_v54, 7  ;;  %v624_v47 = vmul.f32 %v549_v36, %v549_v36 }
 0x101   : > { %v741_v46 = vadd.f32 %v726_v11, %v711_v8  ;;  %v727_v11 = vmul.f32 %v592_v26, %v592_v26  ;;  %v550_v39 = vsub.f32 %v1431_v54, %v535_v55  ;;  %v536_v26 = vrot.slane %v1445_v57, 7 }
 0x103   : > { %v756_v50 = vsub.f32 %v1571_v28, %v741_v46  ;;  %v540_v28 = vrot.slane %v1459_v60, 7  ;;  %v625_v53 = vmul.f32 %v550_v39, %v550_v39  ;;  %v551_v56 = vsub.f32 %v1445_v57, %v536_v26 }
 0x104   : > { %v596_v39 = vsub.f32 %v1445_v57, %v1628_v33  ;;  %v541_v26 = vrot.slane %v1465_v62, 7 }
 0x105   : > { %v771_v46 = vand.u32 2147483647, %v756_v50 }
 0x106   : > { %v1633_v41 = vpop.permute.xlu1 %578  ;;  %v658_v59 = vpop.permute.xlu2 %657  ;;  %v731_v27 = vmul.f32 %v596_v39, %v596_v39 }
 0x107   : > { %v1636_v44 = vpop.permute.xlu0 %582  ;;  %v714_v22 = vadd.f32 %v658_v59, %v624_v47 }
 0x109   : > { %v744_v47 = vadd.f32 %v729_v32, %v714_v22 }
 0x10b   : > { %v759_v10 = vsub.f32 %v1539_v42, %v744_v47  ;;  %v598_v42 = vsub.f32 %v1448_v58, %v1630_v7 }
 0x10d   : > { %v774_v57 = vand.u32 2147483647, %v759_v10  ;;  %v542_v10 = vrot.slane %v1479_v16, 7 }
 0x10e   : > { %v1642_v14 = vpop.permute.xlu1 %584  ;;  %v673_v45 = vpop.permute.xlu2 %672 }
 0x10f   : > { %v1644_v12 = vpop.permute.xlu0 %588 }
 0x116   : > { %v638_v34 = vpop.permute.xlu1 %637 }
 0x117   : > { %v710_v38 = vadd.f32 %v638_v34, %v620_v49  ;;  %v648_v8 = vpop.permute.xlu0 %647 }
 0x118   : > { %v712_v51 = vadd.f32 %v648_v8, %v622_v63  ;;  %v595_v63 = vsub.f32 %v1431_v54, %v571_v9  ;;  %v728_v54 = vmul.f32 %v593_v52, %v593_v52  ;;  %v555_v9 = vsub.f32 %v1459_v60, %v540_v28 }
 0x119   : > { %v740_v36 = vadd.f32 %v725_v1, %v710_v38  ;;  %v732_v52 = vmul.f32 %v597_v43, %v597_v43 }
 0x11a   : > { %v742_v21 = vadd.f32 %v727_v11, %v712_v51  ;;  %v730_v2 = vmul.f32 %v595_v63, %v595_v63  ;;  %v630_v63 = vmul.f32 %v555_v9, %v555_v9 }
 0x11b   : > { %v755_v49 = vsub.f32 %v1575_v30, %v740_v36  ;;  %v627_v30 = vmul.f32 %v552_v20, %v552_v20  ;;  %v543_v20 = vrot.slane %v1476_v3, 7 }
 0x11c   : > { %v757_v55 = vsub.f32 %v1525_v23, %v742_v21  ;;  %v788_v23 = vsel %vm1665_vm2, %v771_v46, 0.0  ;;  %v626_v21 = vmul.f32 %v551_v56, %v551_v56  ;;  %v539_v46 = vrot.slane %v1462_v61, 7 }
 0x11d   : > { %v770_v48 = vand.u32 2147483647, %v755_v49  ;;  %v717_v60 = vadd.f32 %v673_v45, %v627_v30  ;;  %v688_v45 = vpop.permute.xlu2 %687 }
 0x11e   : > { %v772_v29 = vand.u32 2147483647, %v757_v55  ;;  %v653_v34 = vpop.permute.xlu1 %652 }
 0x11f   : > { %v787_v1 = vsel %vm1665_vm2, %v770_v48, 0.0  ;;  %v713_v50 = vadd.f32 %v653_v34, %v623_v25  ;;  %v663_v38 = vpop.permute.xlu0 %662  ;;  %v628_v25 = vmul.f32 %v553_v15, %v553_v15  ;;  %v747_v33 = vadd.f32 %v732_v52, %v717_v60 }
 0x120   : > { %v802_v32 = vadd.f32 %v788_v23, %v787_v1  ;;  %v715_v8 = vadd.f32 %v663_v38, %v625_v53  ;;  %v789_v11 = vsel %vm1665_vm2, %v772_v29, 0.0  ;;  %v735_v53 = vmul.f32 %v600_v5, %v600_v5 }
 0x121   : > { %v743_v51 = vadd.f32 %v728_v54, %v713_v50  ;;  %v733_v48 = vmul.f32 %v598_v42, %v598_v42  ;;  %v556_v34 = vsub.f32 %v1465_v62, %v541_v26  ;;  %v791_v5 = vsel %vm1665_vm2, %v774_v57, 0.0 }
 0x122   : > { %v803_v22 = vadd.f32 %v802_v32, %v789_v11  ;;  %v745_v36 = vadd.f32 %v730_v2, %v715_v8  ;;  %v762_v9 = vsub.f32 %v1556_v37, %v747_v33  ;;  %v720_v23 = vadd.f32 %v688_v45, %v630_v63 }
 0x123   : > { %v758_v28 = vsub.f32 %v1586_v35, %v743_v51  ;;  %v558_v35 = vsub.f32 %v1476_v3, %v543_v20  ;;  %v599_v50 = vsub.f32 %v1462_v61, %v1633_v41  ;;  %v601_v38 = vsub.f32 %v1465_v62, %v1636_v44 }
 0x124   : > { %v760_v49 = vsub.f32 %v1588_v4, %v745_v36  ;;  %v554_v4 = vsub.f32 %v1462_v61, %v539_v46  ;;  %v631_v11 = vmul.f32 %v556_v34, %v556_v34  ;;  %v544_v51 = vrot.slane %v1483_v18, 7 }
 0x125   : > { %v773_v55 = vand.u32 2147483647, %v758_v28  ;;  %v777_v61 = vand.u32 2147483647, %v762_v9  ;;  %v750_v41 = vadd.f32 %v735_v53, %v720_v23  ;;  %v633_v39 = vmul.f32 %v558_v35, %v558_v35  ;;  %v703_v20 = vpop.permute.xlu2 %702 }
 0x126   : > { %v668_v43 = vpop.permute.xlu1 %667  ;;  %v775_v30 = vand.u32 2147483647, %v760_v49  ;;  %v629_v15 = vmul.f32 %v554_v4, %v554_v4  ;;  %v603_v44 = vsub.f32 %v1476_v3, %v1626_v13  ;;  %v736_v46 = vmul.f32 %v601_v38, %v601_v38 }
 0x127   : > { %v790_v47 = vsel %vm1665_vm2, %v773_v55, 0.0  ;;  %v716_v58 = vadd.f32 %v668_v43, %v626_v21  ;;  %v678_v7 = vpop.permute.xlu0 %677  ;;  %v559_v49 = vsub.f32 %v1483_v18, %v544_v51  ;;  %v765_v3 = vsub.f32 %v1569_v24, %v750_v41 }
 0x128   : > { %v804_v54 = vadd.f32 %v803_v22, %v790_v47  ;;  %v718_v29 = vadd.f32 %v678_v7, %v628_v25  ;;  %v792_v32 = vsel %vm1665_vm2, %v775_v30, 0.0  ;;  %v734_v22 = vmul.f32 %v599_v50, %v599_v50 }
 0x129   : > { %v746_v1 = vadd.f32 %v731_v27, %v716_v58  ;;  %v794_v25 = vsel %vm1665_vm2, %v777_v61, 0.0  ;;  %v723_v13 = vadd.f32 %v703_v20, %v633_v39  ;;  %v738_v57 = vmul.f32 %v603_v44, %v603_v44 }
 0x12a   : > { %v805_v56 = vadd.f32 %v804_v54, %v791_v5  ;;  %v748_v2 = vadd.f32 %v733_v48, %v718_v29  ;;  %v602_v55 = vsub.f32 %v1479_v16, %v1642_v14  ;;  %v604_v43 = vsub.f32 %v1483_v18, %v1644_v12 }
 0x12b   : > { %v761_v8 = vsub.f32 %v1598_v17, %v746_v1  ;;  %v634_v30 = vmul.f32 %v559_v49, %v559_v49  ;;  %v780_v58 = vand.u32 2147483647, %v765_v3  ;;  %v753_v7 = vadd.f32 %v738_v57, %v723_v13 }
 0x12c   : > { %v806_v60 = vadd.f32 %v805_v56, %v792_v32  ;;  %v763_v37 = vsub.f32 %v1600_v0, %v748_v2  ;;  %v557_v0 = vsub.f32 %v1479_v16, %v542_v10  ;;  %v737_v54 = vmul.f32 %v602_v55, %v602_v55  ;;  %v1794_v2 = vld [vmem:[#allocation13_spill] sm:$0xff] }
 0x12d   : > { %v776_v62 = vand.u32 2147483647, %v761_v8  ;;  %v739_v34 = vmul.f32 %v604_v43, %v604_v43  ;;  %v768_v12 = vsub.f32 %v1584_v6, %v753_v7 }
 0x12e   : > { %v683_v36 = vpop.permute.xlu1 %682  ;;  %v778_v52 = vand.u32 2147483647, %v763_v37  ;;  %v632_v35 = vmul.f32 %v557_v0, %v557_v0 }
 0x12f   : > { %v793_v17 = vsel %vm1665_vm2, %v776_v62, 0.0  ;;  %v719_v28 = vadd.f32 %v683_v36, %v629_v15  ;;  %v693_v21 = vpop.permute.xlu0 %692  ;;  %v783_v8 = vand.u32 2147483647, %v768_v12 }
 0x130   : > { %v807_v42 = vadd.f32 %v806_v60, %v793_v17  ;;  %v721_v45 = vadd.f32 %v693_v21, %v631_v11  ;;  %v795_v53 = vsel %vm1665_vm2, %v778_v52, 0.0 }
 0x131   : > { %v749_v26 = vadd.f32 %v734_v22, %v719_v28 }
 0x132   : > { %v808_v33 = vadd.f32 %v807_v42, %v794_v25  ;;  %v751_v63 = vadd.f32 %v736_v46, %v721_v45 }
 0x133   : > { %v764_v27 = vsub.f32 %v1610_v40, %v749_v26 }
 0x134   : > { %v809_v47 = vadd.f32 %v808_v33, %v795_v53  ;;  %v766_v24 = vsub.f32 %v1612_v19, %v751_v63  ;;  %v797_v19 = vsel %vm1665_vm2, %v780_v58, 0.0 }
 0x135   : > { %v779_v4 = vand.u32 2147483647, %v764_v27 }
 0x136   : > { %v698_v48 = vpop.permute.xlu1 %697  ;;  %v781_v14 = vand.u32 2147483647, %v766_v24 }
 0x137   : > { %v796_v16 = vsel %vm1665_vm2, %v779_v4, 0.0  ;;  %v722_v40 = vadd.f32 %v698_v48, %v632_v35  ;;  %v708_v29 = vpop.permute.xlu0 %707 }
 0x138   : > { %v810_v5 = vadd.f32 %v809_v47, %v796_v16  ;;  %v724_v18 = vadd.f32 %v708_v29, %v634_v30  ;;  %v798_v50 = vsel %vm1665_vm2, %v781_v14, 0.0 }
 0x139   : > { %v752_v9 = vadd.f32 %v737_v54, %v722_v40 }
 0x13a   : > { %v811_v23 = vadd.f32 %v810_v5, %v797_v19  ;;  %v754_v1 = vadd.f32 %v739_v34, %v724_v18 }
 0x13b   : > { %v767_v38 = vsub.f32 %v1620_v31, %v752_v9  ;;  %v800_v31 = vsel %vm1665_vm2, %v783_v8, 0.0 }
 0x13c   : > { %v812_v56 = vadd.f32 %v811_v23, %v798_v50  ;;  %v769_v32 = vsub.f32 %v1794_v2, %v754_v1 }
 0x13d   : > { %v782_v15 = vand.u32 2147483647, %v767_v38 }
 0x13e   : > { %v784_v10 = vand.u32 2147483647, %v769_v32 }
 0x13f   : > { %v799_v6 = vsel %vm1665_vm2, %v782_v15, 0.0 }
 0x140   : > { %v813_v60 = vadd.f32 %v812_v56, %v799_v6  ;;  %v801_v11 = vsel %vm1665_vm2, %v784_v10, 0.0 }
 0x142   : > { %v814_v37 = vadd.f32 %v813_v60, %v800_v31 }
 0x144   : > { %v815_v51 = vadd.f32 %v814_v37, %v801_v11 }
 0x146   : > { %816 = vst [vmem:[%s227_s12] sm:$0xff] %v815_v51 }
 0x147   : > { %1117 = shalt.err (!%p1114_p13)
}
 0x148   : > { %958 = dma.vmem_to_hbm [thread:$0]  (%p1248_p9), %s831_s18, 128, %s833_s19, %s818_s20  }
 0x149 PF: > { %s844_s5 = sand.u32 1, %s1156_s9   ;;  %p968_p0 = pnand %p940_p12, %p1255_p11 }
 0x14a   : > { %s845_s26 = scalar_lea.sflag [#allocation6], %s844_s5 }
 0x14b   : > { %p969_p1 = pneg %p968_p0 }
 0x14d   : > { %1151 = dma.done.wait (%p969_p1), %s845_s26, 128  }
 0x14e   : > { %1153 = vsyncadd (%p969_p1), %s845_s26, 4294967168  ;;  %s21_s14 = sadd.s32 1, %s1176_s14   ;;  %s1795_s9 = smov %s1160_s10 }
 0x14f   : > { %p18_p2 = scmp.ge.s32.totalorder %s21_s14, 4   ;;  %s1796_s10 = smov %s1164_s11 }
 0x150   : > { %s1797_s11 = smov %s1253_s23  ;;  %s1798_s12 = smov %s1172_s13 }
 0x151   : > { %s1799_s13 = smov %s1801_s17  ;;  %20 = sbr.rel (!%p18_p2) target bundleno = 8 (0x8), region = 86 }
 0x156   :  { %851 = vsyncpa [#allocation5], 1 }
 0x157   :  { %853 = vsyncpa [#allocation5 + $0x1], 1 }
 0x158   :  { %854 = vsyncpa [#allocation8], 1 }
 0x159   :  { %856 = vsyncpa [#allocation8 + $0x1], 1 }
 0x15a   :  { %857 = vsyncpa [#allocation6], 1 }
 0x15b   :  { %859 = vsyncpa [#allocation6 + $0x1], 1 }

</bundles_post_ra>
